<compile_context>
chip_gen: v6e
topology: v6e:2x2x1
jax: 0.10.0
libtpu: 0.0.40
codegen_flags: <defaults>
</compile_context>

<pallas_src>
import jax
import jax.numpy as jnp
from jax import lax
from jax.experimental import pallas as pl
from jax.experimental.pallas import tpu as pltpu  # noqa: F401  (TPU backend)


BN_EPS = 1e-5


def dni_kernel(x_ref, w1_ref, gb_ref, w2_ref, b2_ref, o_ref):
    # fc1: [B, in] @ [in, hid] on the MXU, bf16 operands, f32 accumulation.
    # x is cast to bf16 here (right before the dot) so the f32 copy never
    # needs a second materialization; fc1 bias intentionally omitted
    # (cancelled by train-mode BN mean subtraction).
    x_bf16 = x_ref[...].astype(jnp.bfloat16)
    h = jnp.dot(x_bf16, w1_ref[...], preferred_element_type=jnp.float32)

    # BatchNorm1d, training-mode biased batch statistics, one-pass moments,
    # all in f32 on the VPU; rsqrt goes to the EUP slot.
    gamma = gb_ref[0:1, :]                                   # (1, hid)
    beta = gb_ref[1:2, :]                                    # (1, hid)
    mean = jnp.mean(h, axis=0, keepdims=True)
    mean_sq = jnp.mean(h * h, axis=0, keepdims=True)
    var = jnp.maximum(mean_sq - mean * mean, 0.0)            # clamp: no NaN rsqrt
    scale = gamma * lax.rsqrt(var + BN_EPS)                  # (1, hid)
    shift = beta - mean * scale                              # (1, hid)
    hn = h * scale + shift                                   # single (B,hid) FMA pass

    # ReLU, then fc2 with bf16 MXU operands and f32 accumulation.
    hr = jnp.maximum(hn, 0.0).astype(jnp.bfloat16)
    out = jnp.dot(hr, w2_ref[...], preferred_element_type=jnp.float32)
    o_ref[...] = (out + b2_ref[...]).astype(o_ref.dtype)


def prepare_params(params):
    """One-time glue, hoisted out of the per-call path: transpose Linear
    weights to [in, out], cast matmul operands to bf16, pack gamma/beta into
    one (2, hid) tile, reshape b2 to a lane-major (1, in) tile."""
    hid, in_f = params["w1"].shape
    gb = jnp.stack([params["gamma"], params["beta"]], axis=0).astype(jnp.float32)
    return {
        "w1_t": params["w1"].T.astype(jnp.bfloat16),            # [in, hid]
        "w2_t": params["w2"].T.astype(jnp.bfloat16),            # [hid, in]
        "gb": gb,                                                # [2, hid]
        "b2": params["b2"].reshape(1, in_f).astype(jnp.float32),
        # fc1 bias is not passed to the kernel (train-mode BN cancels it).
    }


@jax.jit
def dni_forward(x, prep):
    """x: [B, input_size] float32.  prep: output of prepare_params()."""
    B, in_f = x.shape
    _, hid = prep["w1_t"].shape

    full = lambda shape: pl.BlockSpec(shape, lambda: (0,) * len(shape))

    return pl.pallas_call(
        dni_kernel,
        out_shape=jax.ShapeDtypeStruct((B, in_f), jnp.float32),
        in_specs=[
            full((B, in_f)),      # x (f32, cast to bf16 in-kernel)
            full((in_f, hid)),    # w1^T (bf16)
            full((2, hid)),       # [gamma; beta] (f32)
            full((hid, in_f)),    # w2^T (bf16)
            full((1, in_f)),      # b2 (f32)
        ],
        out_specs=full((B, in_f)),
    )(x, prep["w1_t"], prep["gb"], prep["w2_t"], prep["b2"])


def init_params(key, input_size, hidden_size):
    """Deterministic init mimicking PyTorch Linear defaults (uniform ±1/sqrt(fan_in))."""
    k1, k2, k3, k4 = jax.random.split(key, 4)
    bound1 = 1.0 / jnp.sqrt(input_size)
    bound2 = 1.0 / jnp.sqrt(hidden_size)
    return {
        "w1": jax.random.uniform(k1, (hidden_size, input_size), jnp.float32,
                                 -bound1, bound1),
        "b1": jax.random.uniform(k2, (hidden_size,), jnp.float32,
                                 -bound1, bound1),
        "gamma": jnp.ones((hidden_size,), jnp.float32),   # BatchNorm1d weight
        "beta": jnp.zeros((hidden_size,), jnp.float32),   # BatchNorm1d bias
        "w2": jax.random.uniform(k3, (input_size, hidden_size), jnp.float32,
                                 -bound2, bound2),
        "b2": jax.random.uniform(k4, (input_size,), jnp.float32,
                                 -bound2, bound2),
    }


def dni_reference(x, params):
    """Pure-JAX f32 reference of the PyTorch forward (training-mode BN)."""
    h = x @ params["w1"].T + params["b1"]
    mean = jnp.mean(h, axis=0, keepdims=True)
    var = jnp.mean((h - mean) ** 2, axis=0, keepdims=True)
    hn = (h - mean) / jnp.sqrt(var + BN_EPS)
    hn = hn * params["gamma"] + params["beta"]
    hr = jnp.maximum(hn, 0.0)
    return hr @ params["w2"].T + params["b2"]


def dni_reference_bf16(x, params):
    """Same math as the kernel (bf16 matmul operands, f32 accumulation,
    folded gamma/shift, clamped one-pass moments) — tight numerical check."""
    h = jnp.dot(x.astype(jnp.bfloat16), params["w1"].T.astype(jnp.bfloat16),
                preferred_element_type=jnp.float32)
    mean = jnp.mean(h, axis=0, keepdims=True)
    var = jnp.maximum(jnp.mean(h * h, axis=0, keepdims=True) - mean * mean, 0.0)
    scale = params["gamma"] * lax.rsqrt(var + BN_EPS)
    shift = params["beta"] - mean * scale
    hn = h * scale + shift
    hr = jnp.maximum(hn, 0.0).astype(jnp.bfloat16)
    out = jnp.dot(hr, params["w2"].T.astype(jnp.bfloat16),
                  preferred_element_type=jnp.float32)
    return out + params["b2"]


if __name__ == "__main__":
    # Small shapes consistent with the module (x is [batch, input_size]).
    batch = 8
    input_size = 256
    hidden_size = 128

    key = jax.random.PRNGKey(0)
    kx, kp = jax.random.split(key)
    x = jax.random.normal(kx, (batch, input_size), jnp.float32)
    params = init_params(kp, input_size, hidden_size)
    prep = prepare_params(params)          # one-time weight prep, off hot path

    out = dni_forward(x, prep)
    out = jax.block_until_ready(out)
    assert out.shape == (batch, input_size)

    # Tight check vs a reference with identical bf16 matmul-operand casts.
    ref_bf16 = dni_reference_bf16(x, params)
    assert jnp.allclose(out, ref_bf16, atol=2e-3, rtol=2e-3), \
        "mismatch vs bf16-matmul reference"

    # Fidelity check vs the full-f32 PyTorch-equivalent forward (bf16 MXU
    # inputs introduce ~1e-2 absolute error at these magnitudes).
    ref_f32 = dni_reference(x, params)
    assert jnp.allclose(out, ref_f32, atol=5e-2, rtol=5e-2), \
        "mismatch vs f32 reference"

    print("KERNEL_OK")
</pallas_src>

<mosaic_0001>
module attributes {stable_mosaic.version = 11 : i64} {
  func.func @dni_kernel(%arg0: memref<8x256xf32, #tpu.memory_space<vmem>>, %arg1: memref<256x128xbf16, #tpu.memory_space<vmem>>, %arg2: memref<2x128xf32, #tpu.memory_space<vmem>>, %arg3: memref<128x256xbf16, #tpu.memory_space<vmem>>, %arg4: memref<1x256xf32, #tpu.memory_space<vmem>>, %arg5: memref<8x256xf32, #tpu.memory_space<vmem>>) attributes {dimension_semantics = [], scalar_prefetch = 0 : i64, scratch_operands = 0 : i64, tpu.core_type = #tpu.core_type<tc>} {
    %c0 = arith.constant 0 : index
    %c0_0 = arith.constant 0 : index
    %0 = vector.load %arg0[%c0, %c0_0] : memref<8x256xf32, #tpu.memory_space<vmem>>, vector<8x256xf32>
    %1 = arith.truncf %0 : vector<8x256xf32> to vector<8x256xbf16>
    %c0_1 = arith.constant 0 : index
    %c0_2 = arith.constant 0 : index
    %2 = vector.load %arg1[%c0_1, %c0_2] : memref<256x128xbf16, #tpu.memory_space<vmem>>, vector<256x128xbf16>
    %cst = arith.constant dense<0.000000e+00> : vector<8x128xf32>
    %3 = tpu.matmul %1, %2, %cst {dimension_numbers = #tpu.dot_dimension_numbers<[1], [0], [0], [1], [0, 0, 1, 1], [], []>} : vector<8x256xbf16>, vector<256x128xbf16>, vector<8x128xf32> -> vector<8x128xf32>
    %c0_3 = arith.constant 0 : index
    %c0_4 = arith.constant 0 : index
    %4 = vector.load %arg2[%c0_3, %c0_4] : memref<2x128xf32, #tpu.memory_space<vmem>>, vector<1x128xf32>
    %c1 = arith.constant 1 : index
    %c0_5 = arith.constant 0 : index
    %5 = vector.load %arg2[%c1, %c0_5] : memref<2x128xf32, #tpu.memory_space<vmem>>, vector<1x128xf32>
    %cst_6 = arith.constant dense<0.000000e+00> : vector<128xf32>
    %6 = vector.multi_reduction <add>, %3, %cst_6 [0] : vector<8x128xf32> to vector<128xf32>
    %7 = vector.shape_cast %6 : vector<128xf32> to vector<1x128xf32>
    %cst_7 = arith.constant 8.000000e+00 : f32
    %8 = vector.broadcast %cst_7 : f32 to vector<1x128xf32>
    %9 = arith.divf %7, %8 : vector<1x128xf32>
    %10 = arith.mulf %3, %3 : vector<8x128xf32>
    %cst_8 = arith.constant dense<0.000000e+00> : vector<128xf32>
    %11 = vector.multi_reduction <add>, %10, %cst_8 [0] : vector<8x128xf32> to vector<128xf32>
    %12 = vector.shape_cast %11 : vector<128xf32> to vector<1x128xf32>
    %cst_9 = arith.constant 8.000000e+00 : f32
    %13 = vector.broadcast %cst_9 : f32 to vector<1x128xf32>
    %14 = arith.divf %12, %13 : vector<1x128xf32>
    %15 = arith.mulf %9, %9 : vector<1x128xf32>
    %16 = arith.subf %14, %15 : vector<1x128xf32>
    %cst_10 = arith.constant 0.000000e+00 : f32
    %17 = vector.broadcast %cst_10 : f32 to vector<1x128xf32>
    %18 = arith.maximumf %16, %17 : vector<1x128xf32>
    %cst_11 = arith.constant 9.99999974E-6 : f32
    %19 = vector.broadcast %cst_11 : f32 to vector<1x128xf32>
    %20 = arith.addf %18, %19 : vector<1x128xf32>
    %21 = math.rsqrt %20 : vector<1x128xf32>
    %22 = arith.mulf %4, %21 : vector<1x128xf32>
    %23 = arith.mulf %9, %22 : vector<1x128xf32>
    %24 = arith.subf %5, %23 : vector<1x128xf32>
    %25 = vector.broadcast %22 : vector<1x128xf32> to vector<8x128xf32>
    %26 = arith.mulf %3, %25 : vector<8x128xf32>
    %27 = vector.broadcast %24 : vector<1x128xf32> to vector<8x128xf32>
    %28 = arith.addf %26, %27 : vector<8x128xf32>
    %cst_12 = arith.constant 0.000000e+00 : f32
    %29 = vector.broadcast %cst_12 : f32 to vector<8x128xf32>
    %30 = arith.maximumf %28, %29 : vector<8x128xf32>
    %31 = arith.truncf %30 : vector<8x128xf32> to vector<8x128xbf16>
    %c0_13 = arith.constant 0 : index
    %c0_14 = arith.constant 0 : index
    %32 = vector.load %arg3[%c0_13, %c0_14] : memref<128x256xbf16, #tpu.memory_space<vmem>>, vector<128x256xbf16>
    %cst_15 = arith.constant dense<0.000000e+00> : vector<8x256xf32>
    %33 = tpu.matmul %31, %32, %cst_15 {dimension_numbers = #tpu.dot_dimension_numbers<[1], [0], [0], [1], [0, 0, 1, 1], [], []>} : vector<8x128xbf16>, vector<128x256xbf16>, vector<8x256xf32> -> vector<8x256xf32>
    %c0_16 = arith.constant 0 : index
    %c0_17 = arith.constant 0 : index
    %34 = vector.load %arg4[%c0_16, %c0_17] : memref<1x256xf32, #tpu.memory_space<vmem>>, vector<1x256xf32>
    %35 = vector.broadcast %34 : vector<1x256xf32> to vector<8x256xf32>
    %36 = arith.addf %33, %35 : vector<8x256xf32>
    %c0_18 = arith.constant 0 : index
    %c0_19 = arith.constant 0 : index
    %37 = vector.load %arg5[%c0_18, %c0_19] : memref<8x256xf32, #tpu.memory_space<vmem>>, vector<8x256xf32>
    tpu.vector_store %arg5[%c0_18, %c0_19], %36 {strides = array<i32>} : memref<8x256xf32, #tpu.memory_space<vmem>>, vector<8x256xf32>,
    return
  }
}

</mosaic_0001>

<bundles_post_ra>
// kernel: dni_forward.1
= control target key start
LH: loop header
LB: loop body
LE: loop exit
PB: predicated region body
PF: predicated region fallthrough
CT: control target
= control target key end

     0   :  { %10 = vsyncpa [#allocation3], 0  ;;  %s726_s0 = inlined_call_operand.hbm [shape: f32[8,256], index: 0, kind: input, shape index: {}]   ;;  %s727_s1 = inlined_call_operand.hbm [shape: bf16[256,128], index: 1, kind: input, shape index: {}]   ;;  %s728_s2 = inlined_call_operand.vmem [shape: f32[2,128], index: 2, kind: input, shape index: {}]   ;;  %s729_s3 = inlined_call_operand.hbm [shape: bf16[128,256], index: 3, kind: input, shape index: {}]   ;;  %s730_s4 = inlined_call_operand.hbm [shape: f32[1,256], index: 4, kind: input, shape index: {}]   ;;  %s731_s5 = inlined_call_operand.hbm [shape: f32[8,256], index: 5, kind: output, shape index: {}]  }
   0x1   :  { %11 = vsyncpa [#allocation6], 0 }
   0x2   :  { %12 = vsyncpa [#allocation9], 0 }
   0x3   :  { %13 = vsyncpa [#allocation4], 0  ;;  %s665_s18 = smov [#allocation5]  }
   0x4   :  { %s29_s19 = sshll.u32 %s665_s18, 4  ;;  %s30_s19 = int_to_ptr.vmem [resolvable:$true] %s29_s19 }
   0x5   :  { %s565_s20 = scalar_lea.vmem %s30_s19, 2048  ;;  %p570_p1 = scmp.lt.s32.totalorder %s30_s19, %s30_s19 }
   0x6   :  { %p566_p0 = scmp.ne.s32.totalorder %s30_s19, %s565_s20  ;;  %p571_p2 = scmp.lt.s32.totalorder %s565_s20, %s565_s20 }
   0x8   :  { %p572_p3 = por %p571_p2, %p570_p1 }
   0xa   :  { %p573_p4 = pnand %p572_p3, %p566_p0 }
   0xc   :  { %576 = shalt.err (!%p573_p4)
}
   0xd   :  { %s666_s21 = smov 64   ;;  %s667_s22 = smov 4  }
   0xe   :  { %35 = dma.hbm_to_vmem [thread:$0]  %s727_s1, 2048, %s30_s19, [#allocation6], %s666_s21, %s666_s21, %s667_s22  }
   0xf   :  { %s668_s25 = smov [#allocation2]   ;;  %s669_s27 = smov [#allocation7]  }
  0x10   :  { %s20_s26 = sshll.u32 %s668_s25, 4  ;;  %s43_s28 = sshll.u32 %s669_s27, 4  ;;  %s21_s26 = int_to_ptr.vmem [resolvable:$true] %s20_s26  ;;  %s44_s28 = int_to_ptr.vmem [resolvable:$true] %s43_s28 }
  0x11   :  { %s585_s29 = scalar_lea.vmem %s21_s26, 256  ;;  %p590_p6 = scmp.lt.s32.totalorder %s21_s26, %s21_s26 }
  0x12   :  { %p586_p5 = scmp.ne.s32.totalorder %s21_s26, %s585_s29  ;;  %p591_p7 = scmp.lt.s32.totalorder %s585_s29, %s585_s29 }
  0x14   :  { %p592_p8 = por %p591_p7, %p590_p6 }
  0x16   :  { %p593_p9 = pnand %p592_p8, %p586_p5 }
  0x18   :  { %596 = shalt.err (!%p593_p9)
}
  0x19   :  { %23 = dma.hbm_to_vmem [thread:$0]  %s726_s0, 256, %s21_s26, [#allocation3]  }
  0x1a   :  { %s605_s7 = scalar_lea.vmem %s44_s28, 2048  ;;  %p610_p11 = scmp.lt.s32.totalorder %s44_s28, %s44_s28 }
  0x1b   :  { %p606_p10 = scmp.ne.s32.totalorder %s44_s28, %s605_s7  ;;  %p611_p12 = scmp.lt.s32.totalorder %s605_s7, %s605_s7 }
  0x1d   :  { %p612_p13 = por %p611_p12, %p610_p11 }
  0x1f   :  { %p613_p0 = pnand %p612_p13, %p606_p10 }
  0x21   :  { %616 = shalt.err (!%p613_p0)
}
  0x22   :  { %s670_s1 = smov 128   ;;  %s671_s8 = smov 8  }
  0x23   :  { %49 = dma.hbm_to_vmem [thread:$0]  %s729_s3, 2048, %s44_s28, [#allocation6], %s670_s1, %s670_s1, %s671_s8  }
  0x24   :  { %s672_s11 = smov [#allocation8]  }
  0x25   :  { %s56_s12 = sshll.u32 %s672_s11, 4  ;;  %s57_s12 = int_to_ptr.vmem [resolvable:$true] %s56_s12 }
  0x26   :  { %s625_s13 = scalar_lea.vmem %s57_s12, 32  ;;  %p630_p2 = scmp.lt.s32.totalorder %s57_s12, %s57_s12 }
  0x27   :  { %p626_p1 = scmp.ne.s32.totalorder %s57_s12, %s625_s13  ;;  %p631_p3 = scmp.lt.s32.totalorder %s625_s13, %s625_s13 }
  0x29   :  { %p632_p4 = por %p631_p3, %p630_p2 }
  0x2b   :  { %p633_p5 = pnand %p632_p4, %p626_p1 }
  0x2d   :  { %636 = shalt.err (!%p633_p5)
}
  0x2e   :  { %59 = dma.hbm_to_vmem [thread:$0]  %s730_s4, 32, %s57_s12, [#allocation9]  }
  0x2f   :  { %657 = dma.done.wait [#allocation3], 256  }
  0x30   :  { %658 = vsyncadd [#allocation3], 4294967040 }
  0x31   :  { %659 = dma.done.wait [#allocation6], 4096  }
  0x32   :  { %660 = vsyncadd [#allocation6], 4294963200 }
  0x33   :  { %661 = dma.done.wait [#allocation9], 32  }
  0x34   :  { %662 = vsyncadd [#allocation9], 4294967264  ;;  %v515_v0 = vld [vmem:[#allocation5 + $0x78] sm:$0xff]   ;;  %v517_v2 = vld [vmem:[#allocation5 + $0x70] sm:$0xff]   ;;  %v673_v25 = vmov 0   ;;  %v271_v61 = vlaneseq  ;;  %s674_s17 = smov [#allocation10]  }
  0x35   :  { %v516_v1 = vld [vmem:[#allocation5 + $0x38] sm:$0xff]   ;;  %483 = vmatprep.subr.bf16.mxu0 %v515_v0  ;;  %v518_v3 = vld [vmem:[#allocation5 + $0x30] sm:$0xff]   ;;  %v519_v4 = vld [vmem:[#allocation5 + $0x68] sm:$0xff]   ;;  %423 = vmatprep.mubr.bf16.mxu1 %v673_v25  ;;  %s440_s18 = sshll.u32 %s674_s17, 4  ;;  %s441_s18 = int_to_ptr.vmem [resolvable:$true] %s440_s18 }
  0x36   :  { %484 = vmatpush3.bf16.msra.mxu0 %v516_v1  ;;  %v520_v5 = vld [vmem:[#allocation5 + $0x28] sm:$0xff]   ;;  %v521_v6 = vld [vmem:[#allocation5 + $0x60] sm:$0xff]   ;;  %v523_v8 = vld [vmem:[#allocation5 + $0x58] sm:$0xff]   ;;  %v272_v62 = vshrl.u32 %v271_v61, 7  ;;  %p642_p7 = scmp.lt.s32.totalorder %s441_s18, %s441_s18 }
  0x37   :  { %485 = vmatprep.subr.bf16.mxu0 %v517_v2  ;;  %v522_v7 = vld [vmem:[#allocation5 + $0x20] sm:$0xff]   ;;  %v524_v9 = vld [vmem:[#allocation5 + $0x18] sm:$0xff]   ;;  %v525_v10 = vld [vmem:[#allocation5 + $0x50] sm:$0xff]  }
  0x38   :  { %v74_v11 = vld [vmem:[#allocation2 + $0x8] sm:$0xff]  ;;  %v526_v12 = vld [vmem:[#allocation5 + $0x10] sm:$0xff]   ;;  %v527_v14 = vld [vmem:[#allocation5 + $0x48] sm:$0xff]   ;;  %v273_v0 = vsub.s32 0, %v272_v62 }
  0x39   :  { %v76_v13 = vpack.c.bf16 %v74_v11, %v74_v11  ;;  %v528_v15 = vld [vmem:[#allocation5 + $0x8] sm:$0xff]   ;;  %v529_v16 = vld [vmem:[#allocation5 + $0x40] sm:$0xff]   ;;  %v73_v18 = vld [vmem:[#allocation2] sm:$0xff] }
  0x3a   :  { %486 = vmatpush3.bf16.msra.mxu0 %v518_v3  ;;  %v530_v17 = vld [vmem:[#allocation5] sm:$0xff]   ;;  %v75_v19 = vpack.c.bf16 %v73_v18, %v73_v18  ;;  %v531_v20 = vld [vmem:[#allocation7 + $0x74] ss:$8 sps:$4 sm:$0xff]   ;;  %v533_v21 = vld [vmem:[#allocation7 + $0x70] ss:$8 sps:$4 sm:$0xff]  }
  0x3b   :  { %487 = vmatprep.subr.bf16.mxu0 %v519_v4  ;;  %237 = vmatprep.mubr.bf16.mxu0 %v76_v13  ;;  %v534_v22 = vld [vmem:[#allocation7 + $0x64] ss:$8 sps:$4 sm:$0xff]   ;;  %v536_v23 = vld [vmem:[#allocation7 + $0x60] ss:$8 sps:$4 sm:$0xff]   ;;  %v537_v24 = vld [vmem:[#allocation7 + $0x54] ss:$8 sps:$4 sm:$0xff]  }
  0x3c   :  { %391 = vmatprep.subr.bf16.mxu1 %v531_v20  ;;  %v539_v26 = vld [vmem:[#allocation7 + $0x50] ss:$8 sps:$4 sm:$0xff]   ;;  %v540_v27 = vld [vmem:[#allocation7 + $0x44] ss:$8 sps:$4 sm:$0xff]   ;;  %v542_v28 = vld [vmem:[#allocation7 + $0x40] ss:$8 sps:$4 sm:$0xff]  }
  0x3d   :  { %392 = vmatpush1.bf16.msra.mxu1 %v533_v21  ;;  %v543_v29 = vld [vmem:[#allocation7 + $0x34] ss:$8 sps:$4 sm:$0xff]   ;;  %v545_v30 = vld [vmem:[#allocation7 + $0x30] ss:$8 sps:$4 sm:$0xff]   ;;  %v546_v31 = vld [vmem:[#allocation7 + $0x24] ss:$8 sps:$4 sm:$0xff]  }
  0x3e   :  { %488 = vmatpush3.bf16.msra.mxu0 %v520_v5  ;;  %393 = vmatprep.subr.bf16.mxu1 %v534_v22  ;;  %v548_v32 = vld [vmem:[#allocation7 + $0x20] ss:$8 sps:$4 sm:$0xff]   ;;  %v549_v33 = vld [vmem:[#allocation7 + $0x14] ss:$8 sps:$4 sm:$0xff]   ;;  %v551_v34 = vld [vmem:[#allocation7 + $0x10] ss:$8 sps:$4 sm:$0xff]  }
  0x3f   :  { %489 = vmatprep.subr.bf16.mxu0 %v521_v6  ;;  %v552_v35 = vld [vmem:[#allocation7 + $0x4] ss:$8 sps:$4 sm:$0xff]   ;;  %v554_v36 = vld [vmem:[#allocation7] ss:$8 sps:$4 sm:$0xff]   ;;  %v245_v63 = vld [vmem:[%s728_s2] sm:$0x1] }
  0x40   :  { %v246_v3 = vld [vmem:[%s728_s2 + $0x1] sm:$0x1]  ;;  %v307_v13 = vsub.s32 1, %v272_v62  ;;  %s637_s2 = scalar_lea.vmem %s441_s18, 256 }
  0x41   :  { %394 = vmatpush1.bf16.msra.mxu1 %v536_v23  ;;  %p638_p6 = scmp.ne.s32.totalorder %s441_s18, %s637_s2  ;;  %p643_p8 = scmp.lt.s32.totalorder %s637_s2, %s637_s2 }
  0x42   :  { %490 = vmatpush3.bf16.msra.mxu0 %v522_v7  ;;  %395 = vmatprep.subr.bf16.mxu1 %v537_v24 }
  0x43   :  { %491 = vmatprep.subr.bf16.mxu0 %v523_v8  ;;  %p644_p9 = por %p643_p8, %p642_p7 }
  0x45   :  { %396 = vmatpush1.bf16.msra.mxu1 %v539_v26  ;;  %p645_p10 = pnand %p644_p9, %p638_p6 }
  0x46   :  { %492 = vmatpush3.bf16.msra.mxu0 %v524_v9  ;;  %397 = vmatprep.subr.bf16.mxu1 %v540_v27 }
  0x47   :  { %493 = vmatprep.subr.bf16.mxu0 %v525_v10 }
  0x49   :  { %398 = vmatpush1.bf16.msra.mxu1 %v542_v28 }
  0x4a   :  { %494 = vmatpush3.bf16.msra.mxu0 %v526_v12  ;;  %399 = vmatprep.subr.bf16.mxu1 %v543_v29  ;;  %v299_v12 = vld [vmem:[#allocation8] sm:$0x3] }
  0x4b   :  { %495 = vmatprep.subr.bf16.mxu0 %v527_v14  ;;  %v304_v14 = vrot.slane %v299_v12, %v273_v0 }
  0x4d   :  { %400 = vmatpush1.bf16.msra.mxu1 %v545_v30 }
  0x4e   :  { %496 = vmatpush3.bf16.msra.mxu0 %v528_v15  ;;  %401 = vmatprep.subr.bf16.mxu1 %v546_v31  ;;  %v308_v15 = vrot.slane %v299_v12, %v307_v13 }
  0x4f   :  { %497 = vmatprep.subr.bf16.mxu0 %v529_v16 }
  0x51   :  { %402 = vmatpush1.bf16.msra.mxu1 %v548_v32 }
  0x52   :  { %498 = vmatpush3.bf16.msra.mxu0 %v530_v17  ;;  %403 = vmatprep.subr.bf16.mxu1 %v549_v33 }
  0x55   :  { %238 = vmatmul.mubr.bf16.vlgmr.msra.gmra.mxu0 %v75_v19  ;;  %404 = vmatpush1.bf16.msra.mxu1 %v551_v34 }
  0x56   :  { %405 = vmatprep.subr.bf16.mxu1 %v552_v35 }
  0x59   :  { %406 = vmatpush1.bf16.msra.mxu1 %v554_v36 }
 0x115   :  { %v499_v37 = vpop.f32.mrf.mxu0 }
 0x117   :  { %v500_v38 = vpop.f32.mrf.mxu0 }
 0x118   :  { %v501_v39 = vadd.f32 %v500_v38, %v499_v37 }
 0x119   :  { %v502_v40 = vpop.f32.mrf.mxu0 }
 0x11a   :  { %v247_v41 = vrot.slane %v501_v39, 4  ;;  %v255_v42 = vmul.f32 %v501_v39, %v501_v39 }
 0x11b   :  { %v503_v43 = vpop.f32.mrf.mxu0 }
 0x11c   :  { %v248_v44 = vadd.f32 %v501_v39, %v247_v41  ;;  %v256_v45 = vrot.slane %v255_v42, 4 }
 0x11e   :  { %v249_v46 = vrot.slane %v248_v44, 2  ;;  %v257_v47 = vadd.f32 %v256_v45, %v255_v42 }
 0x120   :  { %v250_v48 = vadd.f32 %v249_v46, %v248_v44  ;;  %v258_v49 = vrot.slane %v257_v47, 2 }
 0x122   :  { %v251_v50 = vrot.slane %v250_v48, 1  ;;  %v259_v51 = vadd.f32 %v258_v49, %v257_v47 }
 0x124   :  { %v252_v52 = vadd.f32 %v251_v50, %v250_v48  ;;  %v260_v53 = vrot.slane %v259_v51, 1 }
 0x126   :  { %v261_v54 = vadd.f32 %v260_v53, %v259_v51  ;;  %v254_v55 = vmul.f32 0.125, %v252_v52 }
 0x128   :  { %v262_v56 = vmul.f32 0.125, %v261_v54  ;;  %v263_v57 = vmul.f32 %v254_v55, %v254_v55 }
 0x12a   :  { %v264_v58 = vsub.f32 %v262_v56, %v263_v57 }
 0x12c   :  { %v265_v59 = vmax.f32 %v264_v58, 0.0 }
 0x12e   :  { %v266_v60 = vadd.f32 1e-05, %v265_v59 }
 0x130   :  { %555 = vrsqrt.f32 %v266_v60 }
 0x13d   :  { %v556_v1 = vpop.eup %555 }
 0x13e   :  { %v268_v2 = vmul.f32 %v556_v1, %v245_v63 }
 0x140   :  { %v269_v4 = vmul.f32 %v268_v2, %v254_v55  ;;  %v274_v5 = vrot.slane %v268_v2, %v273_v0 }
 0x142   :  { %v270_v6 = vsub.f32 %v246_v3, %v269_v4  ;;  %v275_v7 = vmul.f32 %v501_v39, %v274_v5 }
 0x144   :  { %v279_v8 = vrot.slane %v270_v6, %v273_v0 }
 0x146   :  { %v280_v9 = vadd.f32 %v279_v8, %v275_v7 }
 0x148   :  { %v281_v10 = vmax.f32 %v280_v9, 0.0 }
 0x14a   :  { %v282_v11 = vpack.c.bf16 %v281_v10, %v281_v10 }
 0x14c   :  { %424 = vmatmul.mubr.bf16.vlgmr.msra.gmra.mxu1 %v282_v11 }
 0x20c   :  { %v425_v16 = vpop.f32.mrf.mxu1 }
 0x20d   :  { %v426_v17 = vadd.f32 %v425_v16, %v304_v14 }
 0x20e   :  { %v427_v18 = vpop.f32.mrf.mxu1 }
 0x20f   :  { %432 = vst [vmem:[#allocation10] sm:$0xff] %v426_v17  ;;  %v428_v19 = vadd.f32 %v427_v18, %v308_v15 }
 0x210   :  { %v429_v20 = vpop.f32.mrf.mxu1 }
 0x211   :  { %433 = vst [vmem:[#allocation10 + $0x8] sm:$0xff] %v428_v19 }
 0x212   :  { %v430_v21 = vpop.f32.mrf.mxu1 }
 0x213   :  { %648 = shalt.err (!%p645_p10)
}
 0x214   :  { %443 = dma.vmem_to_hbm [thread:$0]  %s441_s18, 256, %s731_s5, [#allocation4]  }
 0x215   :  { %663 = dma.done.wait [#allocation4], 256  }
 0x216   :  { %664 = vsyncadd [#allocation4], 4294967040 }
 0x217   :  { %447 = vsyncpa [#allocation3], 1 }
 0x218   :  { %448 = vsyncpa [#allocation6], 1 }
 0x219   :  { %449 = vsyncpa [#allocation9], 1 }
 0x21a   :  { %450 = vsyncpa [#allocation4], 1 }

</bundles_post_ra>
